<compile_context>
chip_gen: v7x
topology: tpu7x:2x2x1
jax: 0.10.0
libtpu: 0.0.40
codegen_flags: <defaults>
</compile_context>

<pallas_src>
import jax
import jax.numpy as jnp
from jax import lax
from jax.experimental import pallas as pl
from jax.experimental.pallas import tpu as pltpu

EPS = 1e-5
LANE = 128


def _round_up(n, m):
    return ((n + m - 1) // m) * m


# -----------------------------------------------------------------------------
# Kernel
# -----------------------------------------------------------------------------
def encoder_kernel(alpha_ref,            # SMEM (2,)   f32   [prelu1, prelu2]
                   x_ref,                # VMEM (B, Din)      bf16
                   w1_ref,               # VMEM (Din, L1P)    bf16
                   g1_ref, be1_ref,      # VMEM (1, L1P)      f32
                   w2_ref,               # VMEM (L1P, L2P)    bf16
                   g2_ref, be2_ref,      # VMEM (1, L2P)      f32
                   wh_ref, bh_ref,       # VMEM (L2P, HP) bf16 / (1, HP) f32 fused head
                   out_ref):             # VMEM (B, HP)       f32  [mean | log_var | pad]
    inv_b = 1.0 / x_ref.shape[0]

    # ---- Linear(input_dim, l_1): bias omitted (cancels under train-mode BN) ----
    h = jnp.dot(x_ref[...], w1_ref[...], preferred_element_type=jnp.float32)

    # ---- BatchNorm1d(l_1): single-pass stats, folded into per-column scale/shift ----
    mu1 = jnp.sum(h, axis=0, keepdims=True) * inv_b
    ex2 = jnp.sum(h * h, axis=0, keepdims=True) * inv_b
    var1 = jnp.maximum(ex2 - mu1 * mu1, 0.0)
    scale1 = g1_ref[...] * lax.rsqrt(var1 + EPS)          # (1, L1P) cheap column math
    shift1 = be1_ref[...] - mu1 * scale1
    hn = h * scale1 + shift1                               # 2 wide VALU ops / element
    # ---- PReLU (shared scalar slope from SMEM); emit bf16 so f32 h dies early ----
    a1 = alpha_ref[0]
    h1 = jnp.where(hn > 0, hn, a1 * hn).astype(jnp.bfloat16)

    # ---- Linear(l_1, l_2): bias omitted ----
    h2 = jnp.dot(h1, w2_ref[...], preferred_element_type=jnp.float32)

    # ---- BatchNorm1d(l_2) folded ----
    mu2 = jnp.sum(h2, axis=0, keepdims=True) * inv_b
    ey2 = jnp.sum(h2 * h2, axis=0, keepdims=True) * inv_b
    var2 = jnp.maximum(ey2 - mu2 * mu2, 0.0)
    scale2 = g2_ref[...] * lax.rsqrt(var2 + EPS)
    shift2 = be2_ref[...] - mu2 * scale2
    h2n = h2 * scale2 + shift2
    # ---- PReLU ----
    a2 = alpha_ref[1]
    h2a = jnp.where(h2n > 0, h2n, a2 * h2n).astype(jnp.bfloat16)

    # ---- fused mean|log_var head: one matmul, one lane-dense store ----
    out_ref[...] = jnp.dot(h2a, wh_ref[...],
                           preferred_element_type=jnp.float32) + bh_ref[...]


# -----------------------------------------------------------------------------
# Parameter packing: fuse heads, pad to lane multiples, bf16-cast matmul weights
# -----------------------------------------------------------------------------
def pack_params(p):
    input_dim, l_1 = p["w1"].shape
    l_2 = p["w2"].shape[1]
    z_dim = p["wm"].shape[1]
    L1P = _round_up(l_1, LANE)
    L2P = _round_up(l_2, LANE)
    HP = _round_up(2 * z_dim, LANE)

    def pad2(a, rows, cols):
        return jnp.pad(a, ((0, rows - a.shape[0]), (0, cols - a.shape[1])))

    wh = jnp.concatenate([p["wm"], p["wv"]], axis=1)   # (l_2, 2*z_dim)
    bh = jnp.concatenate([p["bm"], p["bv"]], axis=1)   # (1,   2*z_dim)

    return dict(
        alpha=jnp.concatenate([p["a1"].reshape(-1), p["a2"].reshape(-1)]),
        w1=pad2(p["w1"], input_dim, L1P).astype(jnp.bfloat16),
        g1=pad2(p["g1"], 1, L1P),
        be1=pad2(p["be1"], 1, L1P),
        w2=pad2(p["w2"], L1P, L2P).astype(jnp.bfloat16),
        g2=pad2(p["g2"], 1, L2P),
        be2=pad2(p["be2"], 1, L2P),
        wh=pad2(wh, L2P, HP).astype(jnp.bfloat16),
        bh=pad2(bh, 1, HP),
        z_dim=z_dim,
    )


# -----------------------------------------------------------------------------
# Wrapper
# -----------------------------------------------------------------------------
def _vmem_budget_bytes():
    """Generation-aware VMEM cap: ~0.8x physical, floored at 32 MiB."""
    try:
        cap = int(pltpu.get_tpu_info().vmem_capacity_bytes)
    except Exception:
        cap = 64 << 20          # conservative fallback: v7x per-core physical VMEM
    return max(int(cap * 0.8), 32 << 20)


def dense_encoder3_forward(x, packed):
    B, Din = x.shape
    z_dim = packed["z_dim"]
    HP = packed["bh"].shape[1]
    L1P = packed["w1"].shape[1]
    L2P = packed["w2"].shape[1]

    # x goes to the MXU as bf16 anyway -> cast here to halve its DMA/VMEM footprint.
    x_bf16 = x.astype(jnp.bfloat16)

    args = (packed["alpha"], x_bf16,
            packed["w1"], packed["g1"], packed["be1"],
            packed["w2"], packed["g2"], packed["be2"],
            packed["wh"], packed["bh"])

    vmem = pl.BlockSpec(memory_space=pltpu.MemorySpace.VMEM)
    smem = pl.BlockSpec(memory_space=pltpu.MemorySpace.SMEM)
    in_specs = [smem] + [vmem] * (len(args) - 1)

    def nbytes(a):
        return a.size * a.dtype.itemsize

    in_bytes = sum(nbytes(a) for a in args)
    out_bytes = B * HP * 4
    # operands + f32/bf16 intermediates (h, h1, h2, temporaries) + headroom
    est = (in_bytes + out_bytes
           + 3 * B * (L1P + L2P) * 4
           + (4 << 20))
    vmem_limit = int(min(max(est, 32 << 20), _vmem_budget_bytes()))

    cost = pl.CostEstimate(
        flops=2 * B * (Din * L1P + L1P * L2P + L2P * HP),
        transcendentals=L1P + L2P,              # the two rsqrt rows
        bytes_accessed=in_bytes + out_bytes,
    )

    out = pl.pallas_call(
        encoder_kernel,
        out_shape=jax.ShapeDtypeStruct((B, HP), jnp.float32),
        in_specs=in_specs,
        out_specs=vmem,
        compiler_params=pltpu.CompilerParams(vmem_limit_bytes=vmem_limit),
        cost_estimate=cost,
    )(*args)

    return out[:, :z_dim], out[:, z_dim:2 * z_dim]


# -----------------------------------------------------------------------------
# Raw (PyTorch-layout) parameters + pure-JAX references
# -----------------------------------------------------------------------------
def init_params(key, input_dim, z_dim, l_1=800, l_2=160):
    ks = jax.random.split(key, 8)

    def linear(kw, kb, fan_in, fan_out):
        bound = 1.0 / jnp.sqrt(fan_in)
        w = jax.random.uniform(kw, (fan_in, fan_out), jnp.float32, -bound, bound)
        b = jax.random.uniform(kb, (1, fan_out), jnp.float32, -bound, bound)
        return w, b

    w1, b1 = linear(ks[0], ks[1], input_dim, l_1)
    w2, b2 = linear(ks[2], ks[3], l_1, l_2)
    wm, bm = linear(ks[4], ks[5], l_2, z_dim)
    wv, bv = linear(ks[6], ks[7], l_2, z_dim)
    return dict(
        w1=w1, b1=b1,
        g1=jnp.ones((1, l_1), jnp.float32), be1=jnp.zeros((1, l_1), jnp.float32),
        a1=jnp.full((1, 1), 0.25, jnp.float32),
        w2=w2, b2=b2,
        g2=jnp.ones((1, l_2), jnp.float32), be2=jnp.zeros((1, l_2), jnp.float32),
        a2=jnp.full((1, 1), 0.25, jnp.float32),
        wm=wm, bm=bm, wv=wv, bv=bv,
    )


def _bn(h, g, be):
    mu = h.mean(0, keepdims=True)
    var = ((h - mu) ** 2).mean(0, keepdims=True)
    return (h - mu) / jnp.sqrt(var + EPS) * g + be


def _prelu(h, a):
    return jnp.where(h > 0, h, a[0, 0] * h)


def reference_forward_f32(x, p):
    """Exact f32 reference (PyTorch training-mode semantics, including biases)."""
    h = _prelu(_bn(x @ p["w1"] + p["b1"], p["g1"], p["be1"]), p["a1"])
    h = _prelu(_bn(h @ p["w2"] + p["b2"], p["g2"], p["be2"]), p["a2"])
    return h @ p["wm"] + p["bm"], h @ p["wv"] + p["bv"]


def reference_forward_bf16(x, p):
    """Reference matching the kernel's numerics: bf16 matmul inputs, f32 accumulation,
    f32 BN/PReLU. Pre-BN biases are mathematically irrelevant (BN cancels them)."""
    def mm(a, b):
        return jnp.dot(a.astype(jnp.bfloat16), b.astype(jnp.bfloat16),
                       preferred_element_type=jnp.float32)
    h = _prelu(_bn(mm(x, p["w1"]), p["g1"], p["be1"]), p["a1"])
    h = _prelu(_bn(mm(h, p["w2"]), p["g2"], p["be2"]), p["a2"])
    return mm(h, p["wm"]) + p["bm"], mm(h, p["wv"]) + p["bv"]


if __name__ == "__main__":
    B, input_dim, z_dim = 8, 32, 16          # small test shapes; l_1=800, l_2=160 per module
    key = jax.random.PRNGKey(0)
    kx, kp = jax.random.split(key)
    x = jax.random.normal(kx, (B, input_dim), jnp.float32)

    raw = init_params(kp, input_dim, z_dim)
    packed = pack_params(raw)

    mean, log_var = dense_encoder3_forward(x, packed)
    jax.block_until_ready((mean, log_var))
    assert mean.shape == (B, z_dim) and log_var.shape == (B, z_dim)

    # Primary correctness check: against a reference with identical numerics
    # (bf16 matmul operands, f32 accumulation, f32 BN/PReLU).
    rm_bf16, rv_bf16 = reference_forward_bf16(x, raw)
    assert jnp.allclose(mean, rm_bf16, atol=2e-3, rtol=2e-3)
    assert jnp.allclose(log_var, rv_bf16, atol=2e-3, rtol=2e-3)

    # Semantics sanity check against the exact f32 PyTorch-equivalent forward:
    # only bf16 quantization of the matmul operands separates the two.
    rm_f32, rv_f32 = reference_forward_f32(x, raw)
    assert jnp.allclose(mean, rm_f32, atol=1e-1, rtol=1e-1)
    assert jnp.allclose(log_var, rv_f32, atol=1e-1, rtol=1e-1)

    print("KERNEL_OK")
</pallas_src>

<mosaic_0001>
module attributes {stable_mosaic.version = 11 : i64} {
  func.func @encoder_kernel(%arg0: memref<2xf32, #tpu.memory_space<smem>>, %arg1: memref<8x32xbf16, #tpu.memory_space<vmem>>, %arg2: memref<32x896xbf16, #tpu.memory_space<vmem>>, %arg3: memref<1x896xf32, #tpu.memory_space<vmem>>, %arg4: memref<1x896xf32, #tpu.memory_space<vmem>>, %arg5: memref<896x256xbf16, #tpu.memory_space<vmem>>, %arg6: memref<1x256xf32, #tpu.memory_space<vmem>>, %arg7: memref<1x256xf32, #tpu.memory_space<vmem>>, %arg8: memref<256x128xbf16, #tpu.memory_space<vmem>>, %arg9: memref<1x128xf32, #tpu.memory_space<vmem>>, %arg10: memref<8x128xf32, #tpu.memory_space<vmem>>) attributes {dimension_semantics = [], scalar_prefetch = 0 : i64, scratch_operands = 0 : i64, tpu.core_type = #tpu.core_type<tc>} {
    %c0 = arith.constant 0 : index
    %c0_0 = arith.constant 0 : index
    %0 = vector.load %arg1[%c0, %c0_0] : memref<8x32xbf16, #tpu.memory_space<vmem>>, vector<8x32xbf16>
    %c0_1 = arith.constant 0 : index
    %c0_2 = arith.constant 0 : index
    %1 = vector.load %arg2[%c0_1, %c0_2] : memref<32x896xbf16, #tpu.memory_space<vmem>>, vector<32x896xbf16>
    %cst = arith.constant dense<0.000000e+00> : vector<8x896xf32>
    %2 = tpu.matmul %0, %1, %cst {dimension_numbers = #tpu.dot_dimension_numbers<[1], [0], [0], [1], [0, 0, 1, 1], [], []>} : vector<8x32xbf16>, vector<32x896xbf16>, vector<8x896xf32> -> vector<8x896xf32>
    %cst_3 = arith.constant dense<0.000000e+00> : vector<896xf32>
    %3 = vector.multi_reduction <add>, %2, %cst_3 [0] : vector<8x896xf32> to vector<896xf32>
    %4 = vector.shape_cast %3 : vector<896xf32> to vector<1x896xf32>
    %cst_4 = arith.constant 1.250000e-01 : f32
    %5 = vector.broadcast %cst_4 : f32 to vector<1x896xf32>
    %6 = arith.mulf %4, %5 : vector<1x896xf32>
    %7 = arith.mulf %2, %2 : vector<8x896xf32>
    %cst_5 = arith.constant dense<0.000000e+00> : vector<896xf32>
    %8 = vector.multi_reduction <add>, %7, %cst_5 [0] : vector<8x896xf32> to vector<896xf32>
    %9 = vector.shape_cast %8 : vector<896xf32> to vector<1x896xf32>
    %cst_6 = arith.constant 1.250000e-01 : f32
    %10 = vector.broadcast %cst_6 : f32 to vector<1x896xf32>
    %11 = arith.mulf %9, %10 : vector<1x896xf32>
    %12 = arith.mulf %6, %6 : vector<1x896xf32>
    %13 = arith.subf %11, %12 : vector<1x896xf32>
    %cst_7 = arith.constant 0.000000e+00 : f32
    %14 = vector.broadcast %cst_7 : f32 to vector<1x896xf32>
    %15 = arith.maximumf %13, %14 : vector<1x896xf32>
    %c0_8 = arith.constant 0 : index
    %c0_9 = arith.constant 0 : index
    %16 = vector.load %arg3[%c0_8, %c0_9] : memref<1x896xf32, #tpu.memory_space<vmem>>, vector<1x896xf32>
    %cst_10 = arith.constant 9.99999974E-6 : f32
    %17 = vector.broadcast %cst_10 : f32 to vector<1x896xf32>
    %18 = arith.addf %15, %17 : vector<1x896xf32>
    %19 = math.rsqrt %18 : vector<1x896xf32>
    %20 = arith.mulf %16, %19 : vector<1x896xf32>
    %c0_11 = arith.constant 0 : index
    %c0_12 = arith.constant 0 : index
    %21 = vector.load %arg4[%c0_11, %c0_12] : memref<1x896xf32, #tpu.memory_space<vmem>>, vector<1x896xf32>
    %22 = arith.mulf %6, %20 : vector<1x896xf32>
    %23 = arith.subf %21, %22 : vector<1x896xf32>
    %24 = vector.broadcast %20 : vector<1x896xf32> to vector<8x896xf32>
    %25 = arith.mulf %2, %24 : vector<8x896xf32>
    %26 = vector.broadcast %23 : vector<1x896xf32> to vector<8x896xf32>
    %27 = arith.addf %25, %26 : vector<8x896xf32>
    %c0_13 = arith.constant 0 : index
    %28 = memref.load %arg0[%c0_13] : memref<2xf32, #tpu.memory_space<smem>>
    %cst_14 = arith.constant 0.000000e+00 : f32
    %29 = vector.broadcast %cst_14 : f32 to vector<8x896xf32>
    %30 = arith.cmpf ogt, %27, %29 : vector<8x896xf32>
    %31 = vector.broadcast %28 : f32 to vector<8x896xf32>
    %32 = arith.mulf %31, %27 : vector<8x896xf32>
    %33 = arith.select %30, %27, %32 : vector<8x896xi1>, vector<8x896xf32>
    %34 = arith.truncf %33 : vector<8x896xf32> to vector<8x896xbf16>
    %c0_15 = arith.constant 0 : index
    %c0_16 = arith.constant 0 : index
    %35 = vector.load %arg5[%c0_15, %c0_16] : memref<896x256xbf16, #tpu.memory_space<vmem>>, vector<896x256xbf16>
    %cst_17 = arith.constant dense<0.000000e+00> : vector<8x256xf32>
    %36 = tpu.matmul %34, %35, %cst_17 {dimension_numbers = #tpu.dot_dimension_numbers<[1], [0], [0], [1], [0, 0, 1, 1], [], []>} : vector<8x896xbf16>, vector<896x256xbf16>, vector<8x256xf32> -> vector<8x256xf32>
    %cst_18 = arith.constant dense<0.000000e+00> : vector<256xf32>
    %37 = vector.multi_reduction <add>, %36, %cst_18 [0] : vector<8x256xf32> to vector<256xf32>
    %38 = vector.shape_cast %37 : vector<256xf32> to vector<1x256xf32>
    %cst_19 = arith.constant 1.250000e-01 : f32
    %39 = vector.broadcast %cst_19 : f32 to vector<1x256xf32>
    %40 = arith.mulf %38, %39 : vector<1x256xf32>
    %41 = arith.mulf %36, %36 : vector<8x256xf32>
    %cst_20 = arith.constant dense<0.000000e+00> : vector<256xf32>
    %42 = vector.multi_reduction <add>, %41, %cst_20 [0] : vector<8x256xf32> to vector<256xf32>
    %43 = vector.shape_cast %42 : vector<256xf32> to vector<1x256xf32>
    %cst_21 = arith.constant 1.250000e-01 : f32
    %44 = vector.broadcast %cst_21 : f32 to vector<1x256xf32>
    %45 = arith.mulf %43, %44 : vector<1x256xf32>
    %46 = arith.mulf %40, %40 : vector<1x256xf32>
    %47 = arith.subf %45, %46 : vector<1x256xf32>
    %cst_22 = arith.constant 0.000000e+00 : f32
    %48 = vector.broadcast %cst_22 : f32 to vector<1x256xf32>
    %49 = arith.maximumf %47, %48 : vector<1x256xf32>
    %c0_23 = arith.constant 0 : index
    %c0_24 = arith.constant 0 : index
    %50 = vector.load %arg6[%c0_23, %c0_24] : memref<1x256xf32, #tpu.memory_space<vmem>>, vector<1x256xf32>
    %cst_25 = arith.constant 9.99999974E-6 : f32
    %51 = vector.broadcast %cst_25 : f32 to vector<1x256xf32>
    %52 = arith.addf %49, %51 : vector<1x256xf32>
    %53 = math.rsqrt %52 : vector<1x256xf32>
    %54 = arith.mulf %50, %53 : vector<1x256xf32>
    %c0_26 = arith.constant 0 : index
    %c0_27 = arith.constant 0 : index
    %55 = vector.load %arg7[%c0_26, %c0_27] : memref<1x256xf32, #tpu.memory_space<vmem>>, vector<1x256xf32>
    %56 = arith.mulf %40, %54 : vector<1x256xf32>
    %57 = arith.subf %55, %56 : vector<1x256xf32>
    %58 = vector.broadcast %54 : vector<1x256xf32> to vector<8x256xf32>
    %59 = arith.mulf %36, %58 : vector<8x256xf32>
    %60 = vector.broadcast %57 : vector<1x256xf32> to vector<8x256xf32>
    %61 = arith.addf %59, %60 : vector<8x256xf32>
    %c1 = arith.constant 1 : index
    %62 = memref.load %arg0[%c1] : memref<2xf32, #tpu.memory_space<smem>>
    %cst_28 = arith.constant 0.000000e+00 : f32
    %63 = vector.broadcast %cst_28 : f32 to vector<8x256xf32>
    %64 = arith.cmpf ogt, %61, %63 : vector<8x256xf32>
    %65 = vector.broadcast %62 : f32 to vector<8x256xf32>
    %66 = arith.mulf %65, %61 : vector<8x256xf32>
    %67 = arith.select %64, %61, %66 : vector<8x256xi1>, vector<8x256xf32>
    %68 = arith.truncf %67 : vector<8x256xf32> to vector<8x256xbf16>
    %c0_29 = arith.constant 0 : index
    %c0_30 = arith.constant 0 : index
    %69 = vector.load %arg8[%c0_29, %c0_30] : memref<256x128xbf16, #tpu.memory_space<vmem>>, vector<256x128xbf16>
    %cst_31 = arith.constant dense<0.000000e+00> : vector<8x128xf32>
    %70 = tpu.matmul %68, %69, %cst_31 {dimension_numbers = #tpu.dot_dimension_numbers<[1], [0], [0], [1], [0, 0, 1, 1], [], []>} : vector<8x256xbf16>, vector<256x128xbf16>, vector<8x128xf32> -> vector<8x128xf32>
    %c0_32 = arith.constant 0 : index
    %c0_33 = arith.constant 0 : index
    %71 = vector.load %arg9[%c0_32, %c0_33] : memref<1x128xf32, #tpu.memory_space<vmem>>, vector<1x128xf32>
    %72 = vector.broadcast %71 : vector<1x128xf32> to vector<8x128xf32>
    %73 = arith.addf %70, %72 : vector<8x128xf32>
    %c0_34 = arith.constant 0 : index
    %c0_35 = arith.constant 0 : index
    %74 = vector.load %arg10[%c0_34, %c0_35] : memref<8x128xf32, #tpu.memory_space<vmem>>, vector<8x128xf32>
    tpu.vector_store %arg10[%c0_34, %c0_35], %73 {strides = array<i32>} : memref<8x128xf32, #tpu.memory_space<vmem>>, vector<8x128xf32>,
    return
  }
}

</mosaic_0001>

<bundles_post_ra>
// kernel: tpu_custom_call.1
= control target key start
LH: loop header
LB: loop body
LE: loop exit
PB: predicated region body
PF: predicated region fallthrough
CT: control target
= control target key end

     0   :  { %15 = vsyncpa [#allocation5], 0  ;;  %s2755_s0 = inlined_call_operand.hbm [shape: f32[2], index: 0, kind: input, shape index: {}]   ;;  %s2756_s1 = inlined_call_operand.hbm [shape: bf16[8,32], index: 1, kind: input, shape index: {}]   ;;  %s2757_s2 = inlined_call_operand.hbm [shape: bf16[32,896], index: 2, kind: input, shape index: {}]   ;;  %s2758_s3 = inlined_call_operand.vmem [shape: f32[1,896], index: 3, kind: input, shape index: {}]   ;;  %s2759_s4 = inlined_call_operand.vmem [shape: f32[1,896], index: 4, kind: input, shape index: {}]   ;;  %s2760_s5 = inlined_call_operand.hbm [shape: bf16[896,256], index: 5, kind: input, shape index: {}]   ;;  %s2761_s6 = inlined_call_operand.vmem [shape: f32[1,256], index: 6, kind: input, shape index: {}]   ;;  %s2762_s7 = inlined_call_operand.vmem [shape: f32[1,256], index: 7, kind: input, shape index: {}]   ;;  %s2763_s8 = inlined_call_operand.hbm [shape: bf16[256,128], index: 8, kind: input, shape index: {}]   ;;  %s2764_s9 = inlined_call_operand.vmem [shape: f32[1,128], index: 9, kind: input, shape index: {}]   ;;  %s2765_s10 = inlined_call_operand.hbm [shape: f32[8,128], index: 10, kind: output, shape index: {}]  }
   0x1   :  { %16 = vsyncpa [#allocation3], 0 }
   0x2   :  { %17 = vsyncpa [#allocation8], 0 }
   0x3   :  { %18 = vsyncpa [#allocation11], 0 }
   0x4   :  { %19 = vsyncpa [#allocation4], 0  ;;  %s2441_s13 = smov [#allocation7]   ;;  %s2311_s17 = scalar_lea.hbm %s2757_s2, 1792 }
   0x5   :  { %s43_s14 = sshll.u32 %s2441_s13, 4  ;;  %p2312_p0 = scmp.ne.s32.totalorder %s2757_s2, %s2311_s17  ;;  %s44_s14 = int_to_ptr.vmem [resolvable:$true] %s43_s14 }
   0x6   :  { %p2315_p1 = scmp.lt.u32.totalorder %s2311_s17, %s2757_s2 }
   0x8   :  { %p2317_p2 = pnand %p2315_p1, %p2312_p0 }
   0xa   :  { %2320 = shalt.err (!%p2317_p2)
}
   0xb   :  { %s2321_s22 = scalar_lea.vmem %s44_s14, 1792  ;;  %p2326_p4 = scmp.lt.s32.totalorder %s44_s14, %s44_s14 }
   0xc   :  { %p2322_p3 = scmp.ne.s32.totalorder %s44_s14, %s2321_s22  ;;  %p2327_p5 = scmp.lt.s32.totalorder %s2321_s22, %s2321_s22 }
   0xe   :  { %p2328_p6 = por %p2327_p5, %p2326_p4 }
  0x10   :  { %p2329_p7 = pnand %p2328_p6, %p2322_p3 }
  0x12   :  { %2332 = shalt.err (!%p2329_p7)
}
  0x13   :  { %s2442_s23 = smov 448   ;;  %s2443_s24 = smov 28  }
  0x14   :  { %49 = dma.hbm_to_vmem [thread:$0]  %s2757_s2, 1792, %s44_s14, [#allocation8], %s2442_s23, %s2442_s23, %s2443_s24  }
  0x15   :  { %s2333_s29 = scalar_lea.hbm %s2755_s0, 16 }
  0x16   :  { %p2334_p8 = scmp.ne.s32.totalorder %s2755_s0, %s2333_s29  ;;  %p2337_p9 = scmp.lt.u32.totalorder %s2333_s29, %s2755_s0 }
  0x18   :  { %p2339_p10 = pnand %p2337_p9, %p2334_p8 }
  0x1a   :  { %2342 = shalt.err (!%p2339_p10)
}
  0x1b   :  { %s2444_s15 = smov [#allocation2]   ;;  %s2445_s2 = smov [#allocation6]  }
  0x1c   :  { %27 = dma.hbm_to_smem %s2755_s0, 16, %s2444_s15, [#allocation5]  }
  0x1d   :  { %s34_s14 = sshll.u32 %s2445_s2, 4  ;;  %s2446_s18 = smov [#allocation9]   ;;  %s35_s14 = int_to_ptr.vmem [resolvable:$true] %s34_s14 }
  0x1e   :  { %s59_s19 = sshll.u32 %s2446_s18, 4  ;;  %s2343_s22 = scalar_lea.hbm %s2756_s1, 64  ;;  %s2536_s19 = int_to_ptr.vmem [resolvable:$true] %s59_s19 }
  0x1f   :  { %p2344_p11 = scmp.ne.s32.totalorder %s2756_s1, %s2343_s22  ;;  %p2347_p12 = scmp.lt.u32.totalorder %s2343_s22, %s2756_s1 }
  0x21   :  { %p2349_p13 = pnand %p2347_p12, %p2344_p11 }
  0x23   :  { %2352 = shalt.err (!%p2349_p13)
}
  0x24   :  { %s2353_s0 = scalar_lea.vmem %s35_s14, 64  ;;  %p2358_p1 = scmp.lt.s32.totalorder %s35_s14, %s35_s14 }
  0x25   :  { %p2354_p0 = scmp.ne.s32.totalorder %s35_s14, %s2353_s0  ;;  %p2359_p2 = scmp.lt.s32.totalorder %s2353_s0, %s2353_s0 }
  0x27   :  { %p2360_p3 = por %p2359_p2, %p2358_p1 }
  0x29   :  { %p2361_p4 = pnand %p2360_p3, %p2354_p0 }
  0x2b   :  { %2364 = shalt.err (!%p2361_p4)
}
  0x2c   :  { %37 = dma.hbm_to_vmem [thread:$0]  %s2756_s1, 64, %s35_s14, [#allocation3]  }
  0x2d   :  { %s2365_s11 = scalar_lea.hbm %s2760_s5, 14336 }
  0x2e   :  { %p2366_p5 = scmp.ne.s32.totalorder %s2760_s5, %s2365_s11  ;;  %p2369_p6 = scmp.lt.u32.totalorder %s2365_s11, %s2760_s5 }
  0x30   :  { %p2371_p7 = pnand %p2369_p6, %p2366_p5 }
  0x32   :  { %2374 = shalt.err (!%p2371_p7)
}
  0x33   :  { %s2375_s17 = scalar_lea.vmem %s2536_s19, 14336  ;;  %p2380_p9 = scmp.lt.s32.totalorder %s2536_s19, %s2536_s19 }
  0x34   :  { %p2376_p8 = scmp.ne.s32.totalorder %s2536_s19, %s2375_s17  ;;  %p2381_p10 = scmp.lt.s32.totalorder %s2375_s17, %s2375_s17 }
  0x36   :  { %p2382_p11 = por %p2381_p10, %p2380_p9 }
  0x38   :  { %p2383_p12 = pnand %p2382_p11, %p2376_p8 }
  0x3a   :  { %2386 = shalt.err (!%p2383_p12)
}
  0x3b   :  { %s2447_s1 = smov 128   ;;  %s2448_s2 = smov 8  }
  0x3c   :  { %65 = dma.hbm_to_vmem [thread:$0]  %s2760_s5, 14336, %s2536_s19, [#allocation8], %s2447_s1, %s2447_s1, %s2448_s2  }
  0x3d   :  { %s2449_s20 = smov [#allocation10]   ;;  %s2387_s24 = scalar_lea.hbm %s2763_s8, 2048 }
  0x3e   :  { %s75_s21 = sshll.u32 %s2449_s20, 4  ;;  %p2388_p13 = scmp.ne.s32.totalorder %s2763_s8, %s2387_s24  ;;  %s76_s21 = int_to_ptr.vmem [resolvable:$true] %s75_s21 }
  0x3f   :  { %p2391_p0 = scmp.lt.u32.totalorder %s2387_s24, %s2763_s8 }
  0x41   :  { %p2393_p1 = pnand %p2391_p0, %p2388_p13 }
  0x43   :  { %2396 = shalt.err (!%p2393_p1)
}
  0x44   :  { %s2397_s28 = scalar_lea.vmem %s76_s21, 2048  ;;  %p2402_p3 = scmp.lt.s32.totalorder %s76_s21, %s76_s21 }
  0x45   :  { %p2398_p2 = scmp.ne.s32.totalorder %s76_s21, %s2397_s28  ;;  %p2403_p4 = scmp.lt.s32.totalorder %s2397_s28, %s2397_s28 }
  0x47   :  { %p2404_p5 = por %p2403_p4, %p2402_p3 }
  0x49   :  { %p2405_p6 = pnand %p2404_p5, %p2398_p2 }
  0x4b   :  { %2408 = shalt.err (!%p2405_p6)
}
  0x4c   :  { %s2450_s5 = smov 64   ;;  %s2451_s19 = smov 4  }
  0x4d   :  { %81 = dma.hbm_to_vmem [thread:$0]  %s2763_s8, 2048, %s76_s21, [#allocation11], %s2450_s5, %s2450_s5, %s2451_s19  }
  0x4e   :  { %2431 = dma.done.wait [#allocation5], 16  }
  0x4f   :  { %2432 = vsyncadd [#allocation5], 4294967280 }
  0x50   :  { %2433 = dma.done.wait [#allocation3], 64  }
  0x51   :  { %2434 = vsyncadd [#allocation3], 4294967232 }
  0x52   :  { %2435 = dma.done.wait [#allocation8], 16128  }
  0x53   :  { %2436 = vsyncadd [#allocation8], 4294951168 }
  0x54   :  { %2437 = dma.done.wait [#allocation11], 2048  }
  0x55   :  { %2438 = vsyncadd [#allocation11], 4294965248 }
  0x56   :  { %99 = sfence }
  0x57   :  { %v2089_v0 = vld [vmem:[#allocation7 + $0x4] ss:$28 sps:$4 sm:$0xff]   ;;  %v2091_v1 = vld [vmem:[#allocation7 + $0xc] ss:$28 sps:$4 sm:$0xff]   ;;  %v2452_v2 = vmov 0   ;;  %vm190_vm0 = vcmask 261120  }
  0x58   :  { %226 = vmatprep.mubr.bf16.mxu0 %v2452_v2  ;;  %267 = vmatprep.mubr.bf16.mxu1 %v2452_v2  ;;  %v2093_v3 = vld [vmem:[#allocation7] ss:$28 sps:$4 sm:$0xff]   ;;  %v2094_v4 = vld [vmem:[#allocation7 + $0x8] ss:$28 sps:$4 sm:$0xff]   ;;  %v2099_v7 = vld [vmem:[#allocation7 + $0x38] ss:$28 sps:$4 sm:$0xff]  }
  0x59   :  { %194 = vmatprep.subr.bf16.mxu0 %v2089_v0  ;;  %235 = vmatprep.subr.bf16.mxu1 %v2091_v1  ;;  %v2095_v5 = vld [vmem:[#allocation7 + $0x3c] ss:$28 sps:$4 sm:$0xff]   ;;  %v2097_v6 = vld [vmem:[#allocation7 + $0x44] ss:$28 sps:$4 sm:$0xff]   ;;  %v2103_v10 = vld [vmem:[#allocation7 + $0x14] ss:$28 sps:$4 sm:$0xff]  }
  0x5a   :  { %195 = vmatpush1.bf16.msra.mxu0 %v2093_v3  ;;  %236 = vmatpush1.bf16.msra.mxu1 %v2094_v4  ;;  %v2100_v8 = vld [vmem:[#allocation7 + $0x40] ss:$28 sps:$4 sm:$0xff]   ;;  %v2101_v11 = vld [vmem:[#allocation7 + $0x10] ss:$28 sps:$4 sm:$0xff]   ;;  %v2104_v12 = vld [vmem:[#allocation7 + $0x18] ss:$28 sps:$4 sm:$0xff]  }
  0x5b   :  { %196 = vmatprep.subr.bf16.mxu0 %v2095_v5  ;;  %237 = vmatprep.subr.bf16.mxu1 %v2097_v6  ;;  %v101_v9 = vld [vmem:[#allocation6] sm:$0xf]  ;;  %v2453_v13 = vmov 0.0   ;;  %v2107_v14 = vld [vmem:[#allocation7 + $0x4c] ss:$28 sps:$4 sm:$0xff]   ;;  %vm2454_vm1 = vmmov 0  }
  0x5c   :  { %v2105_v15 = vld [vmem:[#allocation7 + $0x48] ss:$28 sps:$4 sm:$0xff]   ;;  %v2108_v16 = vld [vmem:[#allocation7 + $0x50] ss:$28 sps:$4 sm:$0xff]   ;;  %v2111_v17 = vld [vmem:[#allocation9 + $0x4] ss:$8 sps:$4 sm:$0xff]  }
  0x5d   :  { %v2114_v18 = vld [vmem:[#allocation9 + $0x104] ss:$8 sps:$4 sm:$0xff]   ;;  %v2109_v19 = vld [vmem:[#allocation9] ss:$8 sps:$4 sm:$0xff]   ;;  %v2117_v21 = vld [vmem:[#allocation9 + $0x14] ss:$8 sps:$4 sm:$0xff]  }
  0x5e   :  { %197 = vmatpush1.bf16.msra.mxu0 %v2099_v7  ;;  %238 = vmatpush1.bf16.msra.mxu1 %v2100_v8  ;;  %v2112_v20 = vld [vmem:[#allocation9 + $0x100] ss:$8 sps:$4 sm:$0xff]   ;;  %v2120_v22 = vld [vmem:[#allocation9 + $0x114] ss:$8 sps:$4 sm:$0xff]   ;;  %v2115_v23 = vld [vmem:[#allocation9 + $0x10] ss:$8 sps:$4 sm:$0xff]  }
  0x5f   :  { %276 = vmatprep.subr.bf16.mxu0 %v2103_v10  ;;  %2057 = vmatprep.subr.bf16.mxu1 %v2453_v13  ;;  %v2118_v24 = vld [vmem:[#allocation9 + $0x110] ss:$8 sps:$4 sm:$0xff]   ;;  %v2123_v25 = vld [vmem:[#allocation9 + $0x24] ss:$8 sps:$4 sm:$0xff]   ;;  %v2121_v27 = vld [vmem:[#allocation9 + $0x20] ss:$8 sps:$4 sm:$0xff]  }
  0x60   :  { %v2126_v26 = vld [vmem:[#allocation9 + $0x124] ss:$8 sps:$4 sm:$0xff]   ;;  %v2124_v28 = vld [vmem:[#allocation9 + $0x120] ss:$8 sps:$4 sm:$0xff]   ;;  %v2129_v29 = vld [vmem:[#allocation9 + $0x34] ss:$8 sps:$4 sm:$0xff]  }
  0x61   :  { %1898 = vmatmul.mubr.msk.bf16.vlgmr.msra.gmra.mrb[0].mxu0 %vm190_vm0, %v101_v9  ;;  %1899 = vmatmul.mubr.msk.bf16.vlgmr.msra.gmra.mrb[0].mxu1 %vm190_vm0, %v101_v9  ;;  %v2132_v30 = vld [vmem:[#allocation9 + $0x134] ss:$8 sps:$4 sm:$0xff]   ;;  %v2127_v31 = vld [vmem:[#allocation9 + $0x30] ss:$8 sps:$4 sm:$0xff]   ;;  %v2135_v33 = vld [vmem:[#allocation9 + $0x44] ss:$8 sps:$4 sm:$0xff]  }
  0x62   :  { %277 = vmatpush1.bf16.msra.mxu0 %v2101_v11  ;;  %2058 = vmatpush3.bf16.msra.mxu1 %v2104_v12  ;;  %v2130_v32 = vld [vmem:[#allocation9 + $0x130] ss:$8 sps:$4 sm:$0xff]   ;;  %v2138_v34 = vld [vmem:[#allocation9 + $0x144] ss:$8 sps:$4 sm:$0xff]   ;;  %v2133_v35 = vld [vmem:[#allocation9 + $0x40] ss:$8 sps:$4 sm:$0xff]  }
  0x63   :  { %278 = vmatprep.subr.bf16.mxu0 %v2107_v14  ;;  %2059 = vmatprep.subr.bf16.mxu1 %v2453_v13  ;;  %v2136_v36 = vld [vmem:[#allocation9 + $0x140] ss:$8 sps:$4 sm:$0xff]   ;;  %v2141_v37 = vld [vmem:[#allocation9 + $0x54] ss:$8 sps:$4 sm:$0xff]   ;;  %v2139_v39 = vld [vmem:[#allocation9 + $0x50] ss:$8 sps:$4 sm:$0xff]  }
  0x64   :  { %308 = vmatprep.mubr.bf16.mxu0 %v2452_v2  ;;  %2061 = vmatprep.mubr.msk.bf16.mxu1 %vm2454_vm1, %v2453_v13  ;;  %v2144_v38 = vld [vmem:[#allocation9 + $0x154] ss:$8 sps:$4 sm:$0xff]   ;;  %v2142_v40 = vld [vmem:[#allocation9 + $0x150] ss:$8 sps:$4 sm:$0xff]   ;;  %v2147_v41 = vld [vmem:[#allocation9 + $0x64] ss:$8 sps:$4 sm:$0xff]  }
  0x65   :  { %v2150_v42 = vld [vmem:[#allocation9 + $0x164] ss:$8 sps:$4 sm:$0xff]   ;;  %v2145_v43 = vld [vmem:[#allocation9 + $0x60] ss:$8 sps:$4 sm:$0xff]   ;;  %v2153_v45 = vld [vmem:[#allocation9 + $0x74] ss:$8 sps:$4 sm:$0xff]  }
  0x66   :  { %279 = vmatpush1.bf16.msra.mxu0 %v2105_v15  ;;  %2060 = vmatpush3.bf16.msra.mxu1 %v2108_v16  ;;  %v2148_v44 = vld [vmem:[#allocation9 + $0x160] ss:$8 sps:$4 sm:$0xff]   ;;  %v2156_v46 = vld [vmem:[#allocation9 + $0x174] ss:$8 sps:$4 sm:$0xff]   ;;  %v2151_v47 = vld [vmem:[#allocation9 + $0x70] ss:$8 sps:$4 sm:$0xff]  }
  0x67   :  { %1408 = vmatprep.subr.bf16.mxu1 %v2111_v17  ;;  %1449 = vmatprep.subr.bf16.mxu0 %v2114_v18  ;;  %v2154_v48 = vld [vmem:[#allocation9 + $0x170] ss:$8 sps:$4 sm:$0xff]   ;;  %v2159_v49 = vld [vmem:[#allocation9 + $0x84] ss:$8 sps:$4 sm:$0xff]   ;;  %v2157_v51 = vld [vmem:[#allocation9 + $0x80] ss:$8 sps:$4 sm:$0xff]  }
  0x68   :  { %v2162_v50 = vld [vmem:[#allocation9 + $0x184] ss:$8 sps:$4 sm:$0xff]   ;;  %v2160_v52 = vld [vmem:[#allocation9 + $0x180] ss:$8 sps:$4 sm:$0xff]   ;;  %v2165_v53 = vld [vmem:[#allocation9 + $0x94] ss:$8 sps:$4 sm:$0xff]  }
  0x69   :  { %1900 = vmatmul.mubr.msk.bf16.vlgmr.msra.gmra.mrb[4].mxu0 %vm190_vm0, %v101_v9  ;;  %2062 = vmatmul.mubr.msk.bf16.vlgmr.msra.gmra.mrb[4].mxu1 %vm190_vm0, %v101_v9  ;;  %v2168_v54 = vld [vmem:[#allocation9 + $0x194] ss:$8 sps:$4 sm:$0xff]   ;;  %v2163_v55 = vld [vmem:[#allocation9 + $0x90] ss:$8 sps:$4 sm:$0xff]   ;;  %v2171_v57 = vld [vmem:[#allocation9 + $0xa4] ss:$8 sps:$4 sm:$0xff]  }
  0x6a   :  { %1409 = vmatpush1.bf16.msra.mxu1 %v2109_v19  ;;  %1450 = vmatpush1.bf16.msra.mxu0 %v2112_v20  ;;  %v2166_v56 = vld [vmem:[#allocation9 + $0x190] ss:$8 sps:$4 sm:$0xff]   ;;  %v2174_v58 = vld [vmem:[#allocation9 + $0x1a4] ss:$8 sps:$4 sm:$0xff]   ;;  %v2169_v59 = vld [vmem:[#allocation9 + $0xa0] ss:$8 sps:$4 sm:$0xff]  }
  0x6b   :  { %1410 = vmatprep.subr.bf16.mxu1 %v2117_v21  ;;  %1451 = vmatprep.subr.bf16.mxu0 %v2120_v22  ;;  %v2172_v60 = vld [vmem:[#allocation9 + $0x1a0] ss:$8 sps:$4 sm:$0xff]   ;;  %v2177_v61 = vld [vmem:[#allocation9 + $0xb4] ss:$8 sps:$4 sm:$0xff]   ;;  %v2175_v63 = vld [vmem:[#allocation9 + $0xb0] ss:$8 sps:$4 sm:$0xff]  }
  0x6c   :  { %v2180_v62 = vld [vmem:[#allocation9 + $0x1b4] ss:$8 sps:$4 sm:$0xff]   ;;  %v2178_v0 = vld [vmem:[#allocation9 + $0x1b0] ss:$8 sps:$4 sm:$0xff]   ;;  %v2183_v1 = vld [vmem:[#allocation9 + $0xc4] ss:$8 sps:$4 sm:$0xff]  }
  0x6d   :  { %v2186_v3 = vld [vmem:[#allocation9 + $0x1c4] ss:$8 sps:$4 sm:$0xff]   ;;  %v2181_v4 = vld [vmem:[#allocation9 + $0xc0] ss:$8 sps:$4 sm:$0xff]   ;;  %v2189_v6 = vld [vmem:[#allocation9 + $0xd4] ss:$8 sps:$4 sm:$0xff]  }
  0x6e   :  { %1411 = vmatpush1.bf16.msra.mxu1 %v2115_v23  ;;  %1452 = vmatpush1.bf16.msra.mxu0 %v2118_v24  ;;  %v2184_v5 = vld [vmem:[#allocation9 + $0x1c0] ss:$8 sps:$4 sm:$0xff]   ;;  %v2192_v7 = vld [vmem:[#allocation9 + $0x1d4] ss:$8 sps:$4 sm:$0xff]   ;;  %v2187_v8 = vld [vmem:[#allocation9 + $0xd0] ss:$8 sps:$4 sm:$0xff]   ;;  %v511_v24 = vlaneseq }
  0x6f   :  { %1412 = vmatprep.subr.bf16.mxu1 %v2123_v25  ;;  %1453 = vmatprep.subr.bf16.mxu0 %v2126_v26  ;;  %v2190_v9 = vld [vmem:[#allocation9 + $0x1d0] ss:$8 sps:$4 sm:$0xff]   ;;  %v2195_v10 = vld [vmem:[#allocation9 + $0xe4] ss:$8 sps:$4 sm:$0xff]   ;;  %v2193_v12 = vld [vmem:[#allocation9 + $0xe0] ss:$8 sps:$4 sm:$0xff]  }
  0x70   :  { %v2198_v11 = vld [vmem:[#allocation9 + $0x1e4] ss:$8 sps:$4 sm:$0xff]   ;;  %v2196_v13 = vld [vmem:[#allocation9 + $0x1e0] ss:$8 sps:$4 sm:$0xff]   ;;  %v2199_v14 = vld [vmem:[#allocation9 + $0xf0] ss:$8 sps:$4 sm:$0xff]  }
  0x71   :  { %v2201_v15 = vld [vmem:[#allocation9 + $0xf4] ss:$8 sps:$4 sm:$0xff]   ;;  %v2202_v16 = vld [vmem:[#allocation9 + $0x1f0] ss:$8 sps:$4 sm:$0xff]   ;;  %v2207_v18 = vld [vmem:[#allocation9 + $0x204] ss:$8 sps:$4 sm:$0xff]  }
  0x72   :  { %1413 = vmatpush1.bf16.msra.mxu1 %v2121_v27  ;;  %1454 = vmatpush1.bf16.msra.mxu0 %v2124_v28  ;;  %v2204_v17 = vld [vmem:[#allocation9 + $0x1f4] ss:$8 sps:$4 sm:$0xff]   ;;  %v2210_v19 = vld [vmem:[#allocation9 + $0x304] ss:$8 sps:$4 sm:$0xff]   ;;  %v2455_v22 = vmov 1966171168  }
  0x73   :  { %1414 = vmatprep.subr.bf16.mxu1 %v2129_v29  ;;  %1455 = vmatprep.subr.bf16.mxu0 %v2132_v30  ;;  %v2590_v23 = vunpack.c.l.s4 %v2455_v22  ;;  %s2014_s16 = sld [smem:[#allocation2 + $0x1]]  ;;  %s2456_s2 = smov [#allocation12]  }
  0x74   :  { %s1872_s14 = sshll.u32 %s2456_s2, 4  ;;  %s1873_s14 = int_to_ptr.vmem [resolvable:$true] %s1872_s14 }
  0x75   :  { %s2409_s18 = scalar_lea.vmem %s1873_s14, 128  ;;  %p2414_p8 = scmp.lt.s32.totalorder %s1873_s14, %s1873_s14 }
  0x76   :  { %1415 = vmatpush1.bf16.msra.mxu1 %v2127_v31  ;;  %1456 = vmatpush1.bf16.msra.mxu0 %v2130_v32  ;;  %p2410_p7 = scmp.ne.s32.totalorder %s1873_s14, %s2409_s18  ;;  %p2415_p9 = scmp.lt.s32.totalorder %s2409_s18, %s2409_s18 }
  0x77   :  { %1416 = vmatprep.subr.bf16.mxu1 %v2135_v33  ;;  %1457 = vmatprep.subr.bf16.mxu0 %v2138_v34 }
  0x78   :  { %p2416_p10 = por %p2415_p9, %p2414_p8 }
  0x7a   :  { %1417 = vmatpush1.bf16.msra.mxu1 %v2133_v35  ;;  %1458 = vmatpush1.bf16.msra.mxu0 %v2136_v36  ;;  %p2417_p11 = pnand %p2416_p10, %p2410_p7 }
  0x7b   :  { %1418 = vmatprep.subr.bf16.mxu1 %v2141_v37  ;;  %1459 = vmatprep.subr.bf16.mxu0 %v2144_v38 }
  0x7e   :  { %1419 = vmatpush1.bf16.msra.mxu1 %v2139_v39  ;;  %1460 = vmatpush1.bf16.msra.mxu0 %v2142_v40 }
  0x7f   :  { %1420 = vmatprep.subr.bf16.mxu1 %v2147_v41  ;;  %1461 = vmatprep.subr.bf16.mxu0 %v2150_v42 }
  0x82   :  { %1421 = vmatpush1.bf16.msra.mxu1 %v2145_v43  ;;  %1462 = vmatpush1.bf16.msra.mxu0 %v2148_v44 }
  0x83   :  { %1422 = vmatprep.subr.bf16.mxu1 %v2153_v45  ;;  %1463 = vmatprep.subr.bf16.mxu0 %v2156_v46 }
  0x86   :  { %1423 = vmatpush1.bf16.msra.mxu1 %v2151_v47  ;;  %1464 = vmatpush1.bf16.msra.mxu0 %v2154_v48 }
  0x87   :  { %1424 = vmatprep.subr.bf16.mxu1 %v2159_v49  ;;  %1465 = vmatprep.subr.bf16.mxu0 %v2162_v50 }
  0x8a   :  { %1425 = vmatpush1.bf16.msra.mxu1 %v2157_v51  ;;  %1466 = vmatpush1.bf16.msra.mxu0 %v2160_v52 }
  0x8b   :  { %1426 = vmatprep.subr.bf16.mxu1 %v2165_v53  ;;  %1467 = vmatprep.subr.bf16.mxu0 %v2168_v54 }
  0x8e   :  { %1427 = vmatpush1.bf16.msra.mxu1 %v2163_v55  ;;  %1468 = vmatpush1.bf16.msra.mxu0 %v2166_v56 }
  0x8f   :  { %1428 = vmatprep.subr.bf16.mxu1 %v2171_v57  ;;  %1469 = vmatprep.subr.bf16.mxu0 %v2174_v58 }
  0x92   :  { %1429 = vmatpush1.bf16.msra.mxu1 %v2169_v59  ;;  %1470 = vmatpush1.bf16.msra.mxu0 %v2172_v60 }
  0x93   :  { %1430 = vmatprep.subr.bf16.mxu1 %v2177_v61  ;;  %1471 = vmatprep.subr.bf16.mxu0 %v2180_v62 }
  0x96   :  { %1431 = vmatpush1.bf16.msra.mxu1 %v2175_v63  ;;  %1472 = vmatpush1.bf16.msra.mxu0 %v2178_v0 }
  0x97   :  { %1432 = vmatprep.subr.bf16.mxu1 %v2183_v1  ;;  %1473 = vmatprep.subr.bf16.mxu0 %v2186_v3 }
  0x9a   :  { %1433 = vmatpush1.bf16.msra.mxu1 %v2181_v4  ;;  %1474 = vmatpush1.bf16.msra.mxu0 %v2184_v5 }
  0x9b   :  { %1434 = vmatprep.subr.bf16.mxu1 %v2189_v6  ;;  %1475 = vmatprep.subr.bf16.mxu0 %v2192_v7 }
  0x9e   :  { %1435 = vmatpush1.bf16.msra.mxu1 %v2187_v8  ;;  %1476 = vmatpush1.bf16.msra.mxu0 %v2190_v9 }
  0x9f   :  { %1436 = vmatprep.subr.bf16.mxu1 %v2195_v10  ;;  %1477 = vmatprep.subr.bf16.mxu0 %v2198_v11 }
  0xa2   :  { %1437 = vmatpush1.bf16.msra.mxu1 %v2193_v12  ;;  %1478 = vmatpush1.bf16.msra.mxu0 %v2196_v13 }
  0xa3   :  { %1438 = vmatprep.subr.bf16.mxu1 %v2201_v15  ;;  %1479 = vmatprep.subr.bf16.mxu0 %v2204_v17 }
  0xa6   :  { %1439 = vmatpush1.bf16.msra.mxu1 %v2199_v14  ;;  %1480 = vmatpush1.bf16.msra.mxu0 %v2202_v16 }
  0xa7   :  { %1490 = vmatprep.subr.bf16.mxu0 %v2207_v18  ;;  %1531 = vmatprep.subr.bf16.mxu1 %v2210_v19 }
 0x134   :  { %v2586_v20 = vpop.f32.mrb[0].mxu0  ;;  %v2588_v21 = vpop.f32.mrb[0].mxu1 }
 0x135   :  { %v357_v25 = vrot.slane %v2586_v20, 4  ;;  %v406_v26 = vmul.f32 %v2586_v20, %v2586_v20  ;;  %v369_v27 = vrot.slane %v2588_v21, 4  ;;  %v408_v28 = vmul.f32 %v2588_v21, %v2588_v21  ;;  %v2598_v29 = vpop.f32.mrb[1].mxu0  ;;  %v2600_v30 = vpop.f32.mrb[1].mxu1 }
 0x136   :  { %v363_v31 = vrot.slane %v2598_v29, 4  ;;  %v407_v32 = vmul.f32 %v2598_v29, %v2598_v29  ;;  %v375_v33 = vrot.slane %v2600_v30, 4  ;;  %v409_v34 = vmul.f32 %v2600_v30, %v2600_v30  ;;  %v232_v35 = vpop.f32.mrb[2].mxu0  ;;  %v273_v36 = vpop.f32.mrb[2].mxu1 }
 0x137   :  { %v358_v37 = vadd.f32 %v357_v25, %v2586_v20  ;;  %v413_v38 = vrot.slane %v406_v26, 4  ;;  %v370_v39 = vadd.f32 %v369_v27, %v2588_v21  ;;  %v425_v40 = vrot.slane %v408_v28, 4  ;;  %v233_v41 = vpop.f32.mrb[3].mxu0  ;;  %v274_v42 = vpop.f32.mrb[3].mxu1 }
 0x138   :  { %v364_v43 = vadd.f32 %v363_v31, %v2598_v29  ;;  %v419_v44 = vrot.slane %v407_v32, 4  ;;  %v376_v45 = vadd.f32 %v375_v33, %v2600_v30  ;;  %v431_v46 = vrot.slane %v409_v34, 4 }
 0x139   :  { %v359_v47 = vrot.slane %v358_v37, 2  ;;  %v414_v48 = vadd.f32 %v413_v38, %v406_v26  ;;  %v371_v49 = vrot.slane %v370_v39, 2  ;;  %v426_v50 = vadd.f32 %v425_v40, %v408_v28 }
 0x13a   :  { %v365_v51 = vrot.slane %v364_v43, 2  ;;  %v420_v52 = vadd.f32 %v419_v44, %v407_v32  ;;  %v377_v53 = vrot.slane %v376_v45, 2  ;;  %v432_v54 = vadd.f32 %v431_v46, %v409_v34 }
 0x13b   :  { %v360_v55 = vadd.f32 %v359_v47, %v358_v37  ;;  %v415_v56 = vrot.slane %v414_v48, 2  ;;  %v372_v57 = vadd.f32 %v371_v49, %v370_v39  ;;  %v427_v58 = vrot.slane %v426_v50, 2 }
 0x13c   :  { %v366_v59 = vadd.f32 %v365_v51, %v364_v43  ;;  %v421_v60 = vrot.slane %v420_v52, 2  ;;  %v378_v61 = vadd.f32 %v377_v53, %v376_v45  ;;  %v433_v62 = vrot.slane %v432_v54, 2  ;;  %v2612_v63 = vpop.f32.mrb[4].mxu0  ;;  %v2614_v0 = vpop.f32.mrb[4].mxu1 }
 0x13d   :  { %v361_v1 = vrot.slane %v360_v55, 1  ;;  %v416_v3 = vadd.f32 %v415_v56, %v414_v48  ;;  %v373_v4 = vrot.slane %v372_v57, 1  ;;  %v428_v5 = vadd.f32 %v427_v58, %v426_v50  ;;  %v2616_v6 = vpop.f32.mrb[5].mxu0  ;;  %v2063_v7 = vpop.f32.mrb[5].mxu1 }
 0x13e   :  { %v367_v8 = vrot.slane %v366_v59, 1  ;;  %v422_v9 = vadd.f32 %v421_v60, %v420_v52  ;;  %v379_v10 = vrot.slane %v378_v61, 1  ;;  %v434_v11 = vadd.f32 %v433_v62, %v432_v54  ;;  %v314_v12 = vpop.f32.mrb[6].mxu0  ;;  %v354_v13 = vpop.f32.mrb[6].mxu1 }
 0x13f   :  { %v362_v14 = vadd.f32 %v361_v1, %v360_v55  ;;  %v417_v15 = vrot.slane %v416_v3, 1  ;;  %v374_v16 = vadd.f32 %v373_v4, %v372_v57  ;;  %v429_v17 = vrot.slane %v428_v5, 1  ;;  %v315_v18 = vpop.f32.mrb[7].mxu0  ;;  %v2064_v19 = vpop.f32.mrb[7].mxu1 }
 0x140   :  { %v368_v22 = vadd.f32 %v367_v8, %v366_v59  ;;  %v423_v25 = vrot.slane %v422_v9, 1  ;;  %v380_v26 = vadd.f32 %v379_v10, %v378_v61  ;;  %v435_v27 = vrot.slane %v434_v11, 1 }
 0x141   :  { %v2618_v28 = vmul.f32 0.125, %v362_v14  ;;  %v418_v31 = vadd.f32 %v417_v15, %v416_v3  ;;  %v2620_v32 = vmul.f32 0.125, %v374_v16  ;;  %v430_v33 = vadd.f32 %v429_v17, %v428_v5 }
 0x142   :  { %v2622_v34 = vmul.f32 0.125, %v368_v22  ;;  %v424_v35 = vadd.f32 %v423_v25, %v422_v9  ;;  %v2624_v36 = vmul.f32 0.125, %v380_v26  ;;  %v436_v37 = vadd.f32 %v435_v27, %v434_v11 }
 0x143   :  { %v455_v38 = vmul.f32 0.125, %v418_v31  ;;  %v462_v39 = vmul.f32 %v2618_v28, %v2618_v28  ;;  %v457_v40 = vmul.f32 0.125, %v430_v33  ;;  %v464_v41 = vmul.f32 %v2620_v32, %v2620_v32 }
 0x144   :  { %v456_v42 = vmul.f32 0.125, %v424_v35  ;;  %v463_v43 = vmul.f32 %v2622_v34, %v2622_v34  ;;  %v458_v44 = vmul.f32 0.125, %v436_v37  ;;  %v465_v45 = vmul.f32 %v2624_v36, %v2624_v36 }
 0x145   :  { %v469_v46 = vsub.f32 %v455_v38, %v462_v39  ;;  %v471_v47 = vsub.f32 %v457_v40, %v464_v41  ;;  %v381_v48 = vrot.slane %v2612_v63, 4  ;;  %v410_v49 = vmul.f32 %v2612_v63, %v2612_v63 }
 0x146   :  { %v470_v50 = vsub.f32 %v456_v42, %v463_v43  ;;  %v472_v51 = vsub.f32 %v458_v44, %v465_v45  ;;  %v393_v52 = vrot.slane %v2614_v0, 4  ;;  %v412_v53 = vmul.f32 %v2614_v0, %v2614_v0 }
 0x147   :  { %v476_v54 = vmax.f32 %v469_v46, 0.0  ;;  %v478_v55 = vmax.f32 %v471_v47, 0.0  ;;  %v382_v56 = vadd.f32 %v381_v48, %v2612_v63  ;;  %v437_v57 = vrot.slane %v410_v49, 4 }
 0x148   :  { %v477_v58 = vmax.f32 %v470_v50, 0.0  ;;  %v479_v59 = vmax.f32 %v472_v51, 0.0  ;;  %v394_v60 = vadd.f32 %v393_v52, %v2614_v0  ;;  %v449_v61 = vrot.slane %v412_v53, 4 }
 0x149   :  { %v484_v62 = vadd.f32 1e-05, %v476_v54  ;;  %v486_v1 = vadd.f32 1e-05, %v478_v55  ;;  %v383_v3 = vrot.slane %v382_v56, 2  ;;  %v438_v4 = vadd.f32 %v437_v57, %v410_v49 }
 0x14a   :  { %v485_v5 = vadd.f32 1e-05, %v477_v58  ;;  %v487_v7 = vadd.f32 1e-05, %v479_v59  ;;  %v395_v8 = vrot.slane %v394_v60, 2  ;;  %v450_v9 = vadd.f32 %v449_v61, %v412_v53 }
 0x14b   :  { %2293 = vrsqrt.f32 %v484_v62  ;;  %v384_v10 = vadd.f32 %v383_v3, %v382_v56  ;;  %v439_v11 = vrot.slane %v438_v4, 2  ;;  %v387_v12 = vrot.slane %v2616_v6, 4 }
 0x14c   :  { %2295 = vrsqrt.f32 %v486_v1  ;;  %v396_v13 = vadd.f32 %v395_v8, %v394_v60  ;;  %v451_v14 = vrot.slane %v450_v9, 2  ;;  %v411_v15 = vmul.f32 %v2616_v6, %v2616_v6 }
 0x14d   :  { %2297 = vrsqrt.f32 %v485_v5  ;;  %v385_v16 = vrot.slane %v384_v10, 1  ;;  %v440_v17 = vadd.f32 %v439_v11, %v438_v4  ;;  %v388_v18 = vadd.f32 %v387_v12, %v2616_v6 }
 0x14e   :  { %2299 = vrsqrt.f32 %v487_v7  ;;  %v397_v19 = vrot.slane %v396_v13, 1  ;;  %v452_v22 = vadd.f32 %v451_v14, %v450_v9  ;;  %v443_v25 = vrot.slane %v411_v15, 4 }
 0x14f   :  { %v386_v26 = vadd.f32 %v385_v16, %v384_v10  ;;  %v441_v27 = vrot.slane %v440_v17, 1  ;;  %v389_v31 = vrot.slane %v388_v18, 2  ;;  %v510_v38 = vunpack.c.0.s8 %v2590_v23 }
 0x150   :  { %v398_v33 = vadd.f32 %v397_v19, %v396_v13  ;;  %v453_v35 = vrot.slane %v452_v22, 1  ;;  %v444_v37 = vadd.f32 %v443_v25, %v411_v15  ;;  %v2650_v42 = vshrl.u32 %v511_v24, 7 }
 0x151   :  { %v2647_v39 = vmul.f32 0.125, %v386_v26  ;;  %v442_v40 = vadd.f32 %v441_v27, %v440_v17  ;;  %v390_v41 = vadd.f32 %v389_v31, %v388_v18  ;;  %v483_v31 = vld [vmem:[%s2758_s3] sm:$0xff]  ;;  %s706_s3 = sld [smem:[#allocation2]] }
 0x152   :  { %v2652_v43 = vmul.f32 0.125, %v398_v33  ;;  %v454_v44 = vadd.f32 %v453_v35, %v452_v22  ;;  %v445_v45 = vrot.slane %v444_v37, 2  ;;  %v2659_v24 = vsub.s32 %v510_v38, %v2650_v42 }
 0x153   :  { %v459_v46 = vmul.f32 0.125, %v442_v40  ;;  %v466_v47 = vmul.f32 %v2647_v39, %v2647_v39  ;;  %v391_v48 = vrot.slane %v390_v41, 1  ;;  %v2671_v33 = vsub.s32 0, %v2650_v42 }
 0x154   :  { %v461_v49 = vmul.f32 0.125, %v454_v44  ;;  %v468_v23 = vmul.f32 %v2652_v43, %v2652_v43  ;;  %v446_v50 = vadd.f32 %v445_v45, %v444_v37  ;;  %v2674_v37 = vsub.s32 1, %v2650_v42 }
 0x155   :  { %v2294_v51 = vpop.eup %2293  ;;  %v473_v52 = vsub.f32 %v459_v46, %v466_v47  ;;  %v392_v53 = vadd.f32 %v391_v48, %v390_v41  ;;  %v567_v38 = vsub.s32 2, %v2650_v42  ;;  %v571_v40 = vsub.s32 3, %v2650_v42 }
 0x156   :  { %v2296_v54 = vpop.eup %2295  ;;  %v475_v55 = vsub.f32 %v461_v49, %v468_v23  ;;  %v447_v56 = vrot.slane %v446_v50, 1  ;;  %v575_v41 = vsub.s32 4, %v2650_v42  ;;  %v579_v44 = vsub.s32 5, %v2650_v42 }
 0x157   :  { %v2298_v57 = vpop.eup %2297  ;;  %v404_v58 = vmul.f32 0.125, %v392_v53  ;;  %v480_v61 = vmax.f32 %v473_v52, 0.0  ;;  %v583_v45 = vsub.s32 6, %v2650_v42 }
 0x158   :  { %v2300_v59 = vpop.eup %2299  ;;  %v505_v60 = vcombine.low %v2294_v51, %v2298_v57  ;;  %v448_v62 = vadd.f32 %v447_v56, %v446_v50  ;;  %v482_v3 = vmax.f32 %v475_v55, 0.0 }
 0x159   :  { %v506_v1 = vcombine.low %v2296_v54, %v2300_v59  ;;  %v467_v4 = vmul.f32 %v404_v58, %v404_v58  ;;  %v488_v9 = vadd.f32 1e-05, %v480_v61 }
 0x15a   :  { %v514_v5 = vrot.slane %v505_v60, %v2659_v24  ;;  %v460_v7 = vmul.f32 0.125, %v448_v62  ;;  %v490_v12 = vadd.f32 1e-05, %v482_v3 }
 0x15b   :  { %v521_v8 = vrot.slane %v506_v1, %v2659_v24  ;;  %2301 = vrsqrt.f32 %v488_v9 }
 0x15c   :  { %v474_v10 = vsub.f32 %v460_v7, %v467_v4  ;;  %2303 = vrsqrt.f32 %v490_v12 }
 0x15d   :  { %v536_v11 = vcombine.low %v514_v5, %v521_v8 }
 0x15e   :  { %v481_v13 = vmax.f32 %v474_v10, 0.0 }
 0x15f   :  { %v544_v26 = vrot.slane %v536_v11, %v2659_v24  ;;  %v2707_v11 = vstv %s706_s3 }
 0x160   :  { %v489_v14 = vadd.f32 1e-05, %v481_v13 }
 0x162   :  { %2305 = vrsqrt.f32 %v489_v14 }
 0x165   :  { %v2302_v15 = vpop.eup %2301 }
 0x166   :  { %v2304_v16 = vpop.eup %2303 }
 0x167   :  { %v535_v19 = vrot.slane %v2304_v16, %v2659_v24 }
 0x16c   :  { %v2306_v17 = vpop.eup %2305 }
 0x16d   :  { %v507_v18 = vcombine.low %v2302_v15, %v2306_v17 }
 0x16f   :  { %v528_v22 = vrot.slane %v507_v18, %v2659_v24 }
 0x171   :  { %v537_v25 = vcombine.low %v528_v22, %v535_v19 }
 0x173   :  { %v551_v27 = vrot.slane %v537_v25, %v2659_v24 }
 0x175   :  { %v552_v35 = vcombine.low %v544_v26, %v551_v27 }
 0x177   :  { %v554_v46 = vmul.f32 %v552_v35, %v483_v31 }
 0x179   :  { %v560_v47 = vrot.slane %v554_v46, %v2671_v33  ;;  %v564_v48 = vrot.slane %v554_v46, %v2674_v37  ;;  %v568_v49 = vrot.slane %v554_v46, %v567_v38  ;;  %v572_v23 = vrot.slane %v554_v46, %v571_v40 }
 0x17a   :  { %v576_v50 = vrot.slane %v554_v46, %v575_v41  ;;  %v580_v51 = vrot.slane %v554_v46, %v579_v44  ;;  %v584_v52 = vrot.slane %v554_v46, %v583_v45  ;;  %v2205_v46 = vld [vmem:[#allocation9 + $0x200] ss:$8 sps:$4 sm:$0xff]  }
 0x17b   :  { %v592_v53 = vmul.f32 %v560_v47, %v2618_v28  ;;  %v593_v54 = vmul.f32 %v564_v48, %v2622_v34  ;;  %v594_v55 = vmul.f32 %v568_v49, %v2620_v32  ;;  %v595_v56 = vmul.f32 %v572_v23, %v2624_v36 }
 0x17c   :  { %v596_v42 = vmul.f32 %v576_v50, %v2647_v39  ;;  %v597_v57 = vmul.f32 %v580_v51, %v404_v58  ;;  %v598_v59 = vmul.f32 %v584_v52, %v2652_v43  ;;  %v661_v60 = vmul.f32 %v580_v51, %v2616_v6 }
 0x17d   :  { %v606_v61 = vcombine.low %v592_v53, %v593_v54  ;;  %v607_v62 = vcombine.low %v594_v55, %v595_v56  ;;  %v657_v1 = vmul.f32 %v564_v48, %v2598_v29  ;;  %v659_v3 = vmul.f32 %v572_v23, %v2600_v30  ;;  %v2216_v53 = vld [vmem:[#allocation9 + $0x314] ss:$8 sps:$4 sm:$0xff]   ;;  %v2211_v56 = vld [vmem:[#allocation9 + $0x210] ss:$8 sps:$4 sm:$0xff]  }
 0x17e   :  { %v608_v28 = vcombine.low %v596_v42, %v597_v57  ;;  %v656_v34 = vmul.f32 %v560_v47, %v2586_v20  ;;  %v658_v32 = vmul.f32 %v568_v49, %v2588_v21  ;;  %v662_v58 = vmul.f32 %v584_v52, %v2614_v0  ;;  %v555_v21 = vld [vmem:[%s2759_s4] sm:$0xff]  ;;  %v2208_v47 = vld [vmem:[#allocation9 + $0x300] ss:$8 sps:$4 sm:$0xff]   ;;  %v2213_v52 = vld [vmem:[#allocation9 + $0x214] ss:$8 sps:$4 sm:$0xff]  }
 0x17f   :  { %v615_v36 = vrot.slane %v606_v61, %v2659_v24  ;;  %v622_v39 = vrot.slane %v607_v62, %v2659_v24  ;;  %v660_v43 = vmul.f32 %v576_v50, %v2612_v63  ;;  %v636_v4 = vrot.slane %v598_v59, %v2659_v24  ;;  %v2214_v42 = vld [vmem:[#allocation9 + $0x310] ss:$8 sps:$4 sm:$0xff]   ;;  %v2219_v59 = vld [vmem:[#allocation9 + $0x224] ss:$8 sps:$4 sm:$0xff]   ;;  %v2217_v61 = vld [vmem:[#allocation9 + $0x220] ss:$8 sps:$4 sm:$0xff]  }
 0x180   :  { %v629_v6 = vrot.slane %v608_v28, %v2659_v24  ;;  %v2220_v62 = vld [vmem:[#allocation9 + $0x320] ss:$8 sps:$4 sm:$0xff]   ;;  %v2223_v28 = vld [vmem:[#allocation9 + $0x230] ss:$8 sps:$4 sm:$0xff]  }
 0x181   :  { %v637_v29 = vcombine.low %v615_v36, %v622_v39  ;;  %v2234_v36 = vld [vmem:[#allocation9 + $0x344] ss:$8 sps:$4 sm:$0xff]   ;;  %v2229_v39 = vld [vmem:[#allocation9 + $0x240] ss:$8 sps:$4 sm:$0xff]  }
 0x182   :  { %v638_v5 = vcombine.low %v629_v6, %v636_v4  ;;  %v2235_v6 = vld [vmem:[#allocation9 + $0x250] ss:$8 sps:$4 sm:$0xff]  }
 0x183   :  { %v645_v30 = vrot.slane %v637_v29, %v2659_v24  ;;  %v2238_v4 = vld [vmem:[#allocation9 + $0x350] ss:$8 sps:$4 sm:$0xff]   ;;  %v2243_v29 = vld [vmem:[#allocation9 + $0x264] ss:$8 sps:$4 sm:$0xff]  }
 0x184   :  { %v652_v20 = vrot.slane %v638_v5, %v2659_v24  ;;  %v2246_v5 = vld [vmem:[#allocation9 + $0x364] ss:$8 sps:$4 sm:$0xff]  }
 0x186   :  { %v653_v7 = vcombine.low %v645_v30, %v652_v20  ;;  %v2241_v30 = vld [vmem:[#allocation9 + $0x260] ss:$8 sps:$4 sm:$0xff]  }
 0x187   :  { %v2244_v20 = vld [vmem:[#allocation9 + $0x360] ss:$8 sps:$4 sm:$0xff]  }
 0x188   :  { %v655_v8 = vsub.f32 %v555_v21, %v653_v7  ;;  %v2249_v21 = vld [vmem:[#allocation9 + $0x274] ss:$8 sps:$4 sm:$0xff]  }
 0x189   :  { %v2252_v7 = vld [vmem:[#allocation9 + $0x374] ss:$8 sps:$4 sm:$0xff]  }
 0x18a   :  { %v687_v0 = vrot.slane %v655_v8, %v579_v44  ;;  %v671_v63 = vrot.slane %v655_v8, %v2674_v37  ;;  %v679_v9 = vrot.slane %v655_v8, %v571_v40  ;;  %v667_v10 = vrot.slane %v655_v8, %v2671_v33 }
 0x18b   :  { %v675_v12 = vrot.slane %v655_v8, %v567_v38  ;;  %v691_v13 = vrot.slane %v655_v8, %v583_v45  ;;  %v683_v14 = vrot.slane %v655_v8, %v575_v41 }
 0x18c   :  { %v704_v15 = vadd.f32 %v687_v0, %v661_v60  ;;  %v700_v16 = vadd.f32 %v671_v63, %v657_v1  ;;  %v702_v17 = vadd.f32 %v679_v9, %v659_v3  ;;  %v699_v18 = vadd.f32 %v667_v10, %v656_v34  ;;  %v2222_v60 = vld [vmem:[#allocation9 + $0x324] ss:$8 sps:$4 sm:$0xff]   ;;  %v2225_v1 = vld [vmem:[#allocation9 + $0x234] ss:$8 sps:$4 sm:$0xff]   ;;  %v2226_v34 = vld [vmem:[#allocation9 + $0x330] ss:$8 sps:$4 sm:$0xff]  }
 0x18d   :  { %v701_v19 = vadd.f32 %v675_v12, %v658_v32  ;;  %v2709_v22 = vadd.f32 %v691_v13, %v662_v58  ;;  %v703_v25 = vadd.f32 %v683_v14, %v660_v43  ;;  %v2228_v3 = vld [vmem:[#allocation9 + $0x334] ss:$8 sps:$4 sm:$0xff]   ;;  %v2231_v32 = vld [vmem:[#allocation9 + $0x244] ss:$8 sps:$4 sm:$0xff]   ;;  %v2247_v0 = vld [vmem:[#allocation9 + $0x270] ss:$8 sps:$4 sm:$0xff]  }
 0x18e   :  { %vm708_vm2 = vcmp.gt.f32.partialorder %v700_v16, 0.0  ;;  %v716_v26 = vmul.f32 %v2707_v11, %v700_v16  ;;  %vm710_vm3 = vcmp.gt.f32.partialorder %v702_v17, 0.0  ;;  %v718_v27 = vmul.f32 %v2707_v11, %v702_v17  ;;  %v2237_v58 = vld [vmem:[#allocation9 + $0x254] ss:$8 sps:$4 sm:$0xff]   ;;  %v2250_v63 = vld [vmem:[#allocation9 + $0x370] ss:$8 sps:$4 sm:$0xff]  }
 0x18f   :  { %vm707_vm4 = vcmp.gt.f32.partialorder %v699_v18, 0.0  ;;  %v715_v31 = vmul.f32 %v2707_v11, %v699_v18  ;;  %vm709_vm5 = vcmp.gt.f32.partialorder %v701_v19, 0.0  ;;  %v717_v35 = vmul.f32 %v2707_v11, %v701_v19  ;;  %v2240_v43 = vld [vmem:[#allocation9 + $0x354] ss:$8 sps:$4 sm:$0xff]   ;;  %v2255_v9 = vld [vmem:[#allocation9 + $0x284] ss:$8 sps:$4 sm:$0xff]  }
 0x190   :  { %v723_v38 = vsel %vm708_vm2, %v700_v16, %v716_v26  ;;  %v725_v40 = vsel %vm710_vm3, %v702_v17, %v718_v27  ;;  %vm712_vm6 = vcmp.gt.f32.partialorder %v704_v15, 0.0  ;;  %v720_v41 = vmul.f32 %v2707_v11, %v704_v15  ;;  %v2253_v12 = vld [vmem:[#allocation9 + $0x280] ss:$8 sps:$4 sm:$0xff]   ;;  %v2258_v14 = vld [vmem:[#allocation9 + $0x294] ss:$8 sps:$4 sm:$0xff]  }
 0x191   :  { %v730_v44 = vpack.c.bf16 %v723_v38, %v723_v38  ;;  %v732_v45 = vpack.c.bf16 %v725_v40, %v725_v40  ;;  %v722_v48 = vsel %vm707_vm4, %v699_v18, %v715_v31  ;;  %v724_v49 = vsel %vm709_vm5, %v701_v19, %v717_v35  ;;  %v2259_v16 = vld [vmem:[#allocation9 + $0x2a0] ss:$8 sps:$4 sm:$0xff]   ;;  %v2264_v17 = vld [vmem:[#allocation9 + $0x2b4] ss:$8 sps:$4 sm:$0xff]   ;;  %v2262_v18 = vld [vmem:[#allocation9 + $0x2b0] ss:$8 sps:$4 sm:$0xff]  }
 0x192   :  { %v729_v23 = vpack.c.bf16 %v722_v48, %v722_v48  ;;  %v731_v50 = vpack.c.bf16 %v724_v49, %v724_v49  ;;  %v727_v51 = vsel %vm712_vm6, %v704_v15, %v720_v41  ;;  %vm711_vm7 = vcmp.gt.f32.partialorder %v703_v25, 0.0  ;;  %v2261_v15 = vld [vmem:[#allocation9 + $0x2a4] ss:$8 sps:$4 sm:$0xff]   ;;  %v2268_v26 = vld [vmem:[#allocation9 + $0x2d0] ss:$8 sps:$4 sm:$0xff]  }
 0x193   :  { %1440 = vmatprep.mubr.bf16.mxu1 %v730_v44  ;;  %1481 = vmatprep.mubr.bf16.mxu0 %v732_v45  ;;  %v719_v54 = vmul.f32 %v2707_v11, %v703_v25  ;;  %v734_v55 = vpack.c.bf16 %v727_v51, %v727_v51  ;;  %v721_v8 = vmul.f32 %v2707_v11, %v2709_v22  ;;  %vm713_vm8 = vcmp.gt.f32.partialorder %v2709_v22, 0.0  ;;  %v2256_v11 = vld [vmem:[#allocation9 + $0x290] ss:$8 sps:$4 sm:$0xff]   ;;  %v2267_v19 = vld [vmem:[#allocation9 + $0x2c4] ss:$8 sps:$4 sm:$0xff]  }
 0x194   :  { %1441 = vmatmul.mubr.bf16.vlgmr.msra.gmra.mrb[8].mxu1 %v729_v23  ;;  %1482 = vmatmul.mubr.bf16.vlgmr.msra.gmra.mrb[8].mxu0 %v731_v50  ;;  %v2273_v27 = vld [vmem:[#allocation9 + $0x2e4] ss:$8 sps:$4 sm:$0xff]   ;;  %v2271_v31 = vld [vmem:[#allocation9 + $0x2e0] ss:$8 sps:$4 sm:$0xff]   ;;  %v2276_v35 = vld [vmem:[#allocation9 + $0x2f4] ss:$8 sps:$4 sm:$0xff]  }
 0x195   :  { %1491 = vmatpush1.bf16.msra.mxu0 %v2205_v46  ;;  %1532 = vmatpush1.bf16.msra.mxu1 %v2208_v47  ;;  %v2717_v57 = vsel %vm711_vm7, %v703_v25, %v719_v54  ;;  %v728_v10 = vsel %vm713_vm8, %v2709_v22, %v721_v8  ;;  %v2265_v22 = vld [vmem:[#allocation9 + $0x2c0] ss:$8 sps:$4 sm:$0xff]   ;;  %v2270_v25 = vld [vmem:[#allocation9 + $0x2d4] ss:$8 sps:$4 sm:$0xff]   ;;  %v2274_v38 = vld [vmem:[#allocation9 + $0x2f0] ss:$8 sps:$4 sm:$0xff]  }
 0x196   :  { %1522 = vmatprep.mubr.bf16.mxu0 %v734_v55  ;;  %1492 = vmatprep.subr.bf16.mxu0 %v2213_v52  ;;  %v735_v13 = vpack.c.bf16 %v728_v10, %v728_v10  ;;  %v733_v40 = vpack.c.bf16 %v2717_v57, %v2717_v57  ;;  %v2277_v41 = vld [vmem:[#allocation10 + $0x40] sm:$0xff]   ;;  %v2279_v45 = vld [vmem:[#allocation10 + $0x48] sm:$0xff]   ;;  %v2281_v47 = vld [vmem:[#allocation10 + $0x50] sm:$0xff]  }
 0x197   :  { %1533 = vmatprep.subr.bf16.mxu1 %v2216_v53  ;;  %1563 = vmatprep.mubr.bf16.mxu1 %v2452_v2  ;;  %v2232_v2 = vld [vmem:[#allocation9 + $0x340] ss:$8 sps:$4 sm:$0xff]   ;;  %v2282_v48 = vld [vmem:[#allocation10 + $0x10] sm:$0xff]   ;;  %v2283_v49 = vld [vmem:[#allocation10 + $0x58] sm:$0xff]  }
 0x198   :  { %v2278_v44 = vld [vmem:[#allocation10] sm:$0xff]   ;;  %v2280_v46 = vld [vmem:[#allocation10 + $0x8] sm:$0xff]   ;;  %v2284_v23 = vld [vmem:[#allocation10 + $0x18] sm:$0xff]  }
 0x199   :  { %1493 = vmatpush1.bf16.msra.mxu0 %v2211_v56  ;;  %1534 = vmatpush1.bf16.msra.mxu1 %v2214_v42  ;;  %v2285_v50 = vld [vmem:[#allocation10 + $0x60] sm:$0xff]   ;;  %v2287_v52 = vld [vmem:[#allocation10 + $0x68] sm:$0xff]   ;;  %v2289_v54 = vld [vmem:[#allocation10 + $0x70] sm:$0xff]  }
 0x19a   :  { %1494 = vmatprep.subr.bf16.mxu0 %v2219_v59  ;;  %1535 = vmatprep.subr.bf16.mxu1 %v2222_v60  ;;  %v2286_v51 = vld [vmem:[#allocation10 + $0x20] sm:$0xff]   ;;  %v2288_v53 = vld [vmem:[#allocation10 + $0x28] sm:$0xff]   ;;  %v2290_v55 = vld [vmem:[#allocation10 + $0x30] sm:$0xff]  }
 0x19b   :  { %v2291_v56 = vld [vmem:[#allocation10 + $0x78] sm:$0xff]  }
 0x19c   :  { %v2292_v60 = vld [vmem:[#allocation10 + $0x38] sm:$0xff]  }
 0x19d   :  { %1495 = vmatpush1.bf16.msra.mxu0 %v2217_v61  ;;  %1536 = vmatpush1.bf16.msra.mxu1 %v2220_v62 }
 0x19e   :  { %1496 = vmatprep.subr.bf16.mxu0 %v2225_v1  ;;  %1537 = vmatprep.subr.bf16.mxu1 %v2228_v3 }
 0x1a1   :  { %1497 = vmatpush1.bf16.msra.mxu0 %v2223_v28  ;;  %1538 = vmatpush1.bf16.msra.mxu1 %v2226_v34 }
 0x1a2   :  { %1498 = vmatprep.subr.bf16.mxu0 %v2231_v32  ;;  %1539 = vmatprep.subr.bf16.mxu1 %v2234_v36 }
 0x1a5   :  { %1499 = vmatpush1.bf16.msra.mxu0 %v2229_v39  ;;  %1540 = vmatpush1.bf16.msra.mxu1 %v2232_v2 }
 0x1a6   :  { %1500 = vmatprep.subr.bf16.mxu0 %v2237_v58  ;;  %1541 = vmatprep.subr.bf16.mxu1 %v2240_v43 }
 0x1a9   :  { %1501 = vmatpush1.bf16.msra.mxu0 %v2235_v6  ;;  %1542 = vmatpush1.bf16.msra.mxu1 %v2238_v4 }
 0x1aa   :  { %1502 = vmatprep.subr.bf16.mxu0 %v2243_v29  ;;  %1543 = vmatprep.subr.bf16.mxu1 %v2246_v5 }
 0x1ad   :  { %1503 = vmatpush1.bf16.msra.mxu0 %v2241_v30  ;;  %1544 = vmatpush1.bf16.msra.mxu1 %v2244_v20 }
 0x1ae   :  { %1504 = vmatprep.subr.bf16.mxu0 %v2249_v21  ;;  %1545 = vmatprep.subr.bf16.mxu1 %v2252_v7 }
 0x1b1   :  { %1505 = vmatpush1.bf16.msra.mxu0 %v2247_v0  ;;  %1546 = vmatpush1.bf16.msra.mxu1 %v2250_v63 }
 0x1b2   :  { %1506 = vmatprep.subr.bf16.mxu0 %v2255_v9  ;;  %2035 = vmatprep.subr.bf16.mxu1 %v2277_v41 }
 0x1b4   :  { %1564 = vmatmul.mubr.bf16.vlgmr.msra.gmra.mrb[12].mxu1 %v735_v13 }
 0x1b5   :  { %1507 = vmatpush1.bf16.msra.mxu0 %v2253_v12  ;;  %2036 = vmatpush3.bf16.msra.mxu1 %v2278_v44 }
 0x1b6   :  { %1508 = vmatprep.subr.bf16.mxu0 %v2258_v14  ;;  %2037 = vmatprep.subr.bf16.mxu1 %v2279_v45 }
 0x1b9   :  { %1509 = vmatpush1.bf16.msra.mxu0 %v2256_v11  ;;  %2038 = vmatpush3.bf16.msra.mxu1 %v2280_v46 }
 0x1ba   :  { %1510 = vmatprep.subr.bf16.mxu0 %v2261_v15  ;;  %2039 = vmatprep.subr.bf16.mxu1 %v2281_v47 }
 0x1bd   :  { %1511 = vmatpush1.bf16.msra.mxu0 %v2259_v16  ;;  %2040 = vmatpush3.bf16.msra.mxu1 %v2282_v48 }
 0x1be   :  { %1512 = vmatprep.subr.bf16.mxu0 %v2264_v17  ;;  %2041 = vmatprep.subr.bf16.mxu1 %v2283_v49 }
 0x1c1   :  { %1513 = vmatpush1.bf16.msra.mxu0 %v2262_v18  ;;  %2042 = vmatpush3.bf16.msra.mxu1 %v2284_v23 }
 0x1c2   :  { %1514 = vmatprep.subr.bf16.mxu0 %v2267_v19  ;;  %2043 = vmatprep.subr.bf16.mxu1 %v2285_v50 }
 0x1c5   :  { %1515 = vmatpush1.bf16.msra.mxu0 %v2265_v22  ;;  %2044 = vmatpush3.bf16.msra.mxu1 %v2286_v51 }
 0x1c6   :  { %1516 = vmatprep.subr.bf16.mxu0 %v2270_v25  ;;  %2045 = vmatprep.subr.bf16.mxu1 %v2287_v52 }
 0x1c9   :  { %1517 = vmatpush1.bf16.msra.mxu0 %v2268_v26  ;;  %2046 = vmatpush3.bf16.msra.mxu1 %v2288_v53 }
 0x1ca   :  { %1518 = vmatprep.subr.bf16.mxu0 %v2273_v27  ;;  %2047 = vmatprep.subr.bf16.mxu1 %v2289_v54 }
 0x1cd   :  { %1519 = vmatpush1.bf16.msra.mxu0 %v2271_v31  ;;  %2048 = vmatpush3.bf16.msra.mxu1 %v2290_v55  ;;  %v1608_v55 = vld [vmem:[%s2761_s6] sm:$0x3] }
 0x1ce   :  { %1520 = vmatprep.subr.bf16.mxu0 %v2276_v35  ;;  %2049 = vmatprep.subr.bf16.mxu1 %v2291_v56 }
 0x1d1   :  { %1521 = vmatpush1.bf16.msra.mxu0 %v2274_v38  ;;  %2050 = vmatpush3.bf16.msra.mxu1 %v2292_v60 }
 0x1d4   :  { %1523 = vmatmul.mubr.bf16.vlgmr.msra.gmra.mrb[8].mxu0 %v733_v40 }
 0x267   :  { %v1442_v42 = vpop.f32.mrb[8].mxu1 }
 0x268   :  { %v1444_v57 = vpop.f32.mrb[9].mxu1 }
 0x269   :  { %v1446_v59 = vpop.f32.mrb[10].mxu1 }
 0x26a   :  { %v1447_v61 = vpop.f32.mrb[11].mxu1 }
 0x287   :  { %v1565_v62 = vpop.f32.mrb[12].mxu1 }
 0x288   :  { %v1567_v1 = vpop.f32.mrb[13].mxu1 }
 0x289   :  { %v1569_v3 = vpop.f32.mrb[14].mxu1 }
 0x28a   :  { %v1570_v28 = vpop.f32.mrb[15].mxu1 }
 0x2a7   :  { %v1524_v34 = vpop.f32.mrb[8].mxu0 }
 0x2a8   :  { %v2065_v32 = vadd.f32 %v1524_v34, %v1442_v42  ;;  %v1526_v36 = vpop.f32.mrb[9].mxu0  ;;  %v1632_v34 = vld [vmem:[%s2762_s7] sm:$0x3] }
 0x2a9   :  { %v2067_v39 = vadd.f32 %v1526_v36, %v1444_v57  ;;  %v1528_v2 = vpop.f32.mrb[10].mxu0 }
 0x2aa   :  { %v2066_v58 = vadd.f32 %v2065_v32, %v1565_v62  ;;  %v1529_v43 = vpop.f32.mrb[11].mxu0 }
 0x2ab   :  { %v2068_v6 = vadd.f32 %v2067_v39, %v1567_v1  ;;  %v1683_v43 = vstv %s2014_s16 }
 0x2ac   :  { %v1572_v4 = vrot.slane %v2066_v58, 4  ;;  %v1586_v29 = vmul.f32 %v2066_v58, %v2066_v58 }
 0x2ad   :  { %v1578_v5 = vrot.slane %v2068_v6, 4  ;;  %v1587_v30 = vmul.f32 %v2068_v6, %v2068_v6 }
 0x2ae   :  { %v1573_v20 = vadd.f32 %v2066_v58, %v1572_v4  ;;  %v1588_v21 = vrot.slane %v1586_v29, 4 }
 0x2af   :  { %v1579_v7 = vadd.f32 %v2068_v6, %v1578_v5  ;;  %v1594_v8 = vrot.slane %v1587_v30, 4 }
 0x2b0   :  { %v1574_v0 = vrot.slane %v1573_v20, 2  ;;  %v1589_v63 = vadd.f32 %v1588_v21, %v1586_v29 }
 0x2b1   :  { %v1580_v9 = vrot.slane %v1579_v7, 2  ;;  %v1595_v10 = vadd.f32 %v1594_v8, %v1587_v30 }
 0x2b2   :  { %v1575_v12 = vadd.f32 %v1574_v0, %v1573_v20  ;;  %v1590_v13 = vrot.slane %v1589_v63, 2 }
 0x2b3   :  { %v1581_v14 = vadd.f32 %v1580_v9, %v1579_v7  ;;  %v1596_v11 = vrot.slane %v1595_v10, 2 }
 0x2b4   :  { %v1576_v15 = vrot.slane %v1575_v12, 1  ;;  %v1591_v16 = vadd.f32 %v1590_v13, %v1589_v63 }
 0x2b5   :  { %v1582_v17 = vrot.slane %v1581_v14, 1  ;;  %v1597_v18 = vadd.f32 %v1596_v11, %v1595_v10 }
 0x2b6   :  { %v1577_v19 = vadd.f32 %v1576_v15, %v1575_v12  ;;  %v1592_v22 = vrot.slane %v1591_v16, 1 }
 0x2b7   :  { %v1583_v25 = vadd.f32 %v1582_v17, %v1581_v14  ;;  %v1598_v26 = vrot.slane %v1597_v18, 1 }
 0x2b8   :  { %v1584_v27 = vmul.f32 0.125, %v1577_v19  ;;  %v1593_v31 = vadd.f32 %v1592_v22, %v1591_v16 }
 0x2b9   :  { %v1585_v35 = vmul.f32 0.125, %v1583_v25  ;;  %v1599_v38 = vadd.f32 %v1598_v26, %v1597_v18 }
 0x2ba   :  { %v1600_v40 = vmul.f32 0.125, %v1593_v31  ;;  %v1602_v41 = vmul.f32 %v1584_v27, %v1584_v27 }
 0x2bb   :  { %v1601_v44 = vmul.f32 0.125, %v1599_v38  ;;  %v1603_v45 = vmul.f32 %v1585_v35, %v1585_v35 }
 0x2bc   :  { %v1604_v46 = vsub.f32 %v1600_v40, %v1602_v41 }
 0x2bd   :  { %v1605_v47 = vsub.f32 %v1601_v44, %v1603_v45 }
 0x2be   :  { %v1606_v48 = vmax.f32 %v1604_v46, 0.0 }
 0x2bf   :  { %v1607_v49 = vmax.f32 %v1605_v47, 0.0 }
 0x2c0   :  { %v1609_v23 = vadd.f32 1e-05, %v1606_v48 }
 0x2c1   :  { %v1610_v50 = vadd.f32 1e-05, %v1607_v49 }
 0x2c2   :  { %2307 = vrsqrt.f32 %v1609_v23 }
 0x2c3   :  { %2309 = vrsqrt.f32 %v1610_v50 }
 0x2cc   :  { %v2308_v51 = vpop.eup %2307 }
 0x2cd   :  { %v2310_v52 = vpop.eup %2309 }
 0x2ce   :  { %v1615_v53 = vcombine.low %v2308_v51, %v2310_v52 }
 0x2d0   :  { %v1622_v54 = vrot.slane %v1615_v53, %v2659_v24 }
 0x2d2   :  { %v1629_v56 = vrot.slane %v1622_v54, %v2659_v24 }
 0x2d4   :  { %v1631_v42 = vmul.f32 %v1629_v56, %v1608_v55 }
 0x2d6   :  { %v1637_v57 = vrot.slane %v1631_v42, %v2671_v33  ;;  %v1641_v59 = vrot.slane %v1631_v42, %v2674_v37 }
 0x2d8   :  { %v1644_v60 = vmul.f32 %v1637_v57, %v1584_v27  ;;  %v1645_v61 = vmul.f32 %v1641_v59, %v1585_v35  ;;  %v1666_v62 = vmul.f32 %v2068_v6, %v1641_v59  ;;  %v1665_v1 = vmul.f32 %v2066_v58, %v1637_v57 }
 0x2da   :  { %v1648_v3 = vcombine.low %v1644_v60, %v1645_v61 }
 0x2dc   :  { %v1655_v28 = vrot.slane %v1648_v3, %v2659_v24 }
 0x2de   :  { %v1662_v32 = vrot.slane %v1655_v28, %v2659_v24 }
 0x2e0   :  { %v1664_v36 = vsub.f32 %v1632_v34, %v1662_v32 }
 0x2e2   :  { %v1671_v39 = vrot.slane %v1664_v36, %v2671_v33  ;;  %v1675_v2 = vrot.slane %v1664_v36, %v2674_v37  ;;  %v2015_v33 = vld [vmem:[%s2764_s9] ss:$0 sm:$0xff] }
 0x2e4   :  { %v1678_v4 = vadd.f32 %v1671_v39, %v1665_v1  ;;  %v1679_v29 = vadd.f32 %v1675_v2, %v1666_v62 }
 0x2e6   :  { %vm1682_vm9 = vcmp.gt.f32.partialorder %v1679_v29, 0.0  ;;  %v1684_v58 = vmul.f32 %v1683_v43, %v1678_v4  ;;  %v1685_v6 = vmul.f32 %v1683_v43, %v1679_v29  ;;  %vm1681_vm10 = vcmp.gt.f32.partialorder %v1678_v4, 0.0 }
 0x2e8   :  { %v1687_v5 = vsel %vm1682_vm9, %v1679_v29, %v1685_v6  ;;  %v1686_v30 = vsel %vm1681_vm10, %v1678_v4, %v1684_v58 }
 0x2e9   :  { %v1689_v20 = vpack.c.bf16 %v1687_v5, %v1687_v5  ;;  %v1688_v21 = vpack.c.bf16 %v1686_v30, %v1686_v30 }
 0x2eb   :  { %1857 = vmatprep.mubr.bf16.mxu1 %v1689_v20 }
 0x2ec   :  { %1858 = vmatmul.mubr.bf16.vlgmr.msra.gmra.mrb[16].mxu1 %v1688_v21 }
 0x3bf   :  { %v2051_v7 = vpop.f32.mrb[16].mxu1 }
 0x3c0   :  { %v2052_v24 = vpop.f32.mrb[17].mxu1 }
 0x3c1   :  { %v2053_v37 = vadd.f32 %v2052_v24, %v2051_v7  ;;  %v2054_v8 = vpop.f32.mrb[18].mxu1 }
 0x3c2   :  { %v2055_v0 = vpop.f32.mrb[19].mxu1 }
 0x3c3   :  { %v1860_v63 = vadd.f32 %v2053_v37, %v2015_v33 }
 0x3c5   :  { %1865 = vst [vmem:[#allocation12] sm:$0xff] %v1860_v63 }
 0x3c6   :  { %2420 = shalt.err (!%p2417_p11)
}
 0x3c7   :  { %s2421_s22 = scalar_lea.hbm %s2765_s10, 128 }
 0x3c8   :  { %p2422_p12 = scmp.ne.s32.totalorder %s2765_s10, %s2421_s22  ;;  %p2425_p13 = scmp.lt.u32.totalorder %s2421_s22, %s2765_s10 }
 0x3ca   :  { %p2427_p0 = pnand %p2425_p13, %p2422_p12 }
 0x3cc   :  { %2430 = shalt.err (!%p2427_p0)
}
 0x3cd   :  { %1875 = dma.vmem_to_hbm [thread:$0]  %s1873_s14, 128, %s2765_s10, [#allocation4]  }
 0x3ce   :  { %2439 = dma.done.wait [#allocation4], 128  }
 0x3cf   :  { %2440 = vsyncadd [#allocation4], 4294967168 }
 0x3d0   :  { %1879 = vsyncpa [#allocation3], 1 }
 0x3d1   :  { %1880 = vsyncpa [#allocation8], 1 }
 0x3d2   :  { %1881 = vsyncpa [#allocation11], 1 }
 0x3d3   :  { %1882 = vsyncpa [#allocation4], 1 }
 0x3d4   :  { %1883 = vsyncpa [#allocation5], 1 }

</bundles_post_ra>
